<compile_context>
chip_gen: v6e
topology: v6e:2x2x1
jax: 0.10.0
libtpu: 0.0.40
codegen_flags: <defaults>
</compile_context>

<pallas_src>
import functools

import jax
import jax.numpy as jnp
from jax.experimental import pallas as pl
from jax.experimental.pallas import tpu as pltpu

LANES = 128  # lane-dense width for the whole fused chain


def _round_up(x, m):
    return (x + m - 1) // m * m


# ----------------------------------------------------------------------------
# Pallas kernel: the entire MLP forward, fused.  Weights/biases are packed
# blocks resident in VMEM; x / out are (TILE_B, 128) tiles over a batch grid.
# ----------------------------------------------------------------------------
def mlp_kernel(x_ref, w_ref, b_ref, o_ref):
    n_layers = w_ref.shape[0]
    h = x_ref[...].astype(jnp.float32)
    for i in range(n_layers):                      # static unroll (9 layers)
        y = jnp.dot(h, w_ref[i], preferred_element_type=jnp.float32)
        y = y + b_ref[i]                           # [1,128] broadcast add
        # dropout (p=0.2) before layer index 6 -> identity in eval mode
        h = jnp.maximum(y, 0.0) if i < n_layers - 1 else y
    o_ref[...] = h.astype(o_ref.dtype)


# ----------------------------------------------------------------------------
# Parameter setup (deterministic, PyTorch-default-style uniform init).
# nn.Linear stores weight as [out, in]; packing transposes to [in, out].
# ----------------------------------------------------------------------------
def init_linear(key, in_f, out_f):
    kw, kb = jax.random.split(key)
    bound = 1.0 / jnp.sqrt(jnp.float32(in_f))
    w = jax.random.uniform(kw, (out_f, in_f), jnp.float32, -bound, bound)
    b = jax.random.uniform(kb, (out_f,), jnp.float32, -bound, bound)
    return w, b


def init_mlp_params(key, config):
    in_features = config["n_features"] * config["n_nodes"]
    n_hidden = config["n_hidden"]
    dims = [(in_features, in_features)] * 5 + \
           [(in_features, n_hidden), (n_hidden, n_hidden),
            (n_hidden, n_hidden), (n_hidden, in_features)]
    keys = jax.random.split(key, len(dims))
    return [init_linear(k, i, o) for k, (i, o) in zip(keys, dims)]


def prepare_params(params):
    """One-time host-side packing: [n_layers,128,128] W, [n_layers,1,128] b."""
    n_layers = len(params)
    w_packed = jnp.zeros((n_layers, LANES, LANES), jnp.float32)
    b_packed = jnp.zeros((n_layers, 1, LANES), jnp.float32)
    for i, (w, b) in enumerate(params):
        out_f, in_f = w.shape
        assert in_f <= LANES and out_f <= LANES
        w_packed = w_packed.at[i, :in_f, :out_f].set(jnp.transpose(w))
        b_packed = b_packed.at[i, 0, :out_f].set(b)
    return jax.device_put(w_packed), jax.device_put(b_packed)


# ----------------------------------------------------------------------------
# Wrapper around pallas_call.
# ----------------------------------------------------------------------------
@functools.partial(jax.jit, static_argnames=("out_features",))
def mlp_forward(x, w_packed, b_packed, out_features):
    batch, in_f = x.shape
    n_layers = w_packed.shape[0]

    # Batch tiling: tiny batches -> one 8-row tile; big batches -> 256-row
    # tiles pipelined over a parallel grid (weights stay VMEM-resident).
    tile_b = min(256, _round_up(batch, 8))
    b_pad = _round_up(batch, tile_b)
    grid = (b_pad // tile_b,)

    # Zero-pad activations to [b_pad, 128] (exact: zeros propagate).
    x_pad = jnp.zeros((b_pad, LANES), jnp.float32).at[:batch, :in_f].set(x)

    out = pl.pallas_call(
        mlp_kernel,
        out_shape=jax.ShapeDtypeStruct((b_pad, LANES), jnp.float32),
        grid_spec=pltpu.PrefetchScalarGridSpec(
            num_scalar_prefetch=0,
            grid=grid,
            in_specs=[
                pl.BlockSpec((tile_b, LANES), lambda i: (i, 0)),
                pl.BlockSpec((n_layers, LANES, LANES), lambda i: (0, 0, 0)),
                pl.BlockSpec((n_layers, 1, LANES), lambda i: (0, 0, 0)),
            ],
            out_specs=pl.BlockSpec((tile_b, LANES), lambda i: (i, 0)),
        ),
        compiler_params=pltpu.CompilerParams(
            dimension_semantics=("parallel",)),
    )(x_pad, w_packed, b_packed)

    return out[:batch, :out_features]


# ----------------------------------------------------------------------------
# Pure-JAX reference (for a sanity check).
# ----------------------------------------------------------------------------
def mlp_reference(x, params):
    h = x
    for i, (w, b) in enumerate(params):
        h = h @ w.T + b
        if i != len(params) - 1:
            h = jnp.maximum(h, 0.0)
    return h


if __name__ == "__main__":
    config = {"n_features": 4, "n_nodes": 8, "n_hidden": 64}
    in_features = config["n_features"] * config["n_nodes"]   # 32
    batch = 2

    key = jax.random.PRNGKey(0)
    k_x, k_p = jax.random.split(key)
    x = jax.random.normal(k_x, (batch, in_features), jnp.float32)
    params = init_mlp_params(k_p, config)

    # One-time packing (hoisted out of the per-call forward).
    w_packed, b_packed = prepare_params(params)

    out = mlp_forward(x, w_packed, b_packed, in_features)
    jax.block_until_ready(out)

    ref = mlp_reference(x, params)
    assert out.shape == (batch, in_features), out.shape
    assert jnp.allclose(out, ref, atol=1e-4, rtol=1e-4), \
        float(jnp.max(jnp.abs(out - ref)))

    print("KERNEL_OK")
</pallas_src>

<mosaic_0001>
module attributes {stable_mosaic.version = 11 : i64} {
  func.func @mlp_kernel(%arg0: i32, %arg1: memref<8x128xf32, #tpu.memory_space<vmem>>, %arg2: memref<9x128x128xf32, #tpu.memory_space<vmem>>, %arg3: memref<9x1x128xf32, #tpu.memory_space<vmem>>, %arg4: memref<8x128xf32, #tpu.memory_space<vmem>>) attributes {dimension_semantics = [#tpu.dimension_semantics<parallel>], iteration_bounds = array<i64: 1>, scalar_prefetch = 0 : i64, scratch_operands = 0 : i64, tpu.core_type = #tpu.core_type<tc>, window_params = [{transform_indices = @transform_0, window_bounds = array<i64: 8, 128>}, {pipeline_mode = #tpu.pipeline_mode<synchronous>, transform_indices = @transform_1, window_bounds = array<i64: 9, 128, 128>}, {pipeline_mode = #tpu.pipeline_mode<synchronous>, transform_indices = @transform_2, window_bounds = array<i64: 9, 1, 128>}, {transform_indices = @transform_3, window_bounds = array<i64: 8, 128>}]} {
    %c0 = arith.constant 0 : index
    %c0_0 = arith.constant 0 : index
    %0 = vector.load %arg1[%c0, %c0_0] : memref<8x128xf32, #tpu.memory_space<vmem>>, vector<8x128xf32>
    %c0_1 = arith.constant 0 : index
    %c0_2 = arith.constant 0 : index
    %c0_3 = arith.constant 0 : index
    %1 = vector.load %arg2[%c0_1, %c0_2, %c0_3] : memref<9x128x128xf32, #tpu.memory_space<vmem>>, vector<1x128x128xf32>
    %2 = vector.shape_cast %1 : vector<1x128x128xf32> to vector<128x128xf32>
    %cst = arith.constant dense<0.000000e+00> : vector<8x128xf32>
    %3 = tpu.matmul %0, %2, %cst {dimension_numbers = #tpu.dot_dimension_numbers<[1], [0], [0], [1], [0, 0, 1, 1], [], []>} : vector<8x128xf32>, vector<128x128xf32>, vector<8x128xf32> -> vector<8x128xf32>
    %c0_4 = arith.constant 0 : index
    %c0_5 = arith.constant 0 : index
    %c0_6 = arith.constant 0 : index
    %4 = vector.load %arg3[%c0_4, %c0_5, %c0_6] : memref<9x1x128xf32, #tpu.memory_space<vmem>>, vector<1x1x128xf32>
    %5 = vector.shape_cast %4 : vector<1x1x128xf32> to vector<1x128xf32>
    %6 = vector.broadcast %5 : vector<1x128xf32> to vector<8x128xf32>
    %7 = arith.addf %3, %6 : vector<8x128xf32>
    %cst_7 = arith.constant 0.000000e+00 : f32
    %8 = vector.broadcast %cst_7 : f32 to vector<8x128xf32>
    %9 = arith.maximumf %7, %8 : vector<8x128xf32>
    %c1 = arith.constant 1 : index
    %c0_8 = arith.constant 0 : index
    %c0_9 = arith.constant 0 : index
    %10 = vector.load %arg2[%c1, %c0_8, %c0_9] : memref<9x128x128xf32, #tpu.memory_space<vmem>>, vector<1x128x128xf32>
    %11 = vector.shape_cast %10 : vector<1x128x128xf32> to vector<128x128xf32>
    %cst_10 = arith.constant dense<0.000000e+00> : vector<8x128xf32>
    %12 = tpu.matmul %9, %11, %cst_10 {dimension_numbers = #tpu.dot_dimension_numbers<[1], [0], [0], [1], [0, 0, 1, 1], [], []>} : vector<8x128xf32>, vector<128x128xf32>, vector<8x128xf32> -> vector<8x128xf32>
    %c1_11 = arith.constant 1 : index
    %c0_12 = arith.constant 0 : index
    %c0_13 = arith.constant 0 : index
    %13 = vector.load %arg3[%c1_11, %c0_12, %c0_13] : memref<9x1x128xf32, #tpu.memory_space<vmem>>, vector<1x1x128xf32>
    %14 = vector.shape_cast %13 : vector<1x1x128xf32> to vector<1x128xf32>
    %15 = vector.broadcast %14 : vector<1x128xf32> to vector<8x128xf32>
    %16 = arith.addf %12, %15 : vector<8x128xf32>
    %cst_14 = arith.constant 0.000000e+00 : f32
    %17 = vector.broadcast %cst_14 : f32 to vector<8x128xf32>
    %18 = arith.maximumf %16, %17 : vector<8x128xf32>
    %c2 = arith.constant 2 : index
    %c0_15 = arith.constant 0 : index
    %c0_16 = arith.constant 0 : index
    %19 = vector.load %arg2[%c2, %c0_15, %c0_16] : memref<9x128x128xf32, #tpu.memory_space<vmem>>, vector<1x128x128xf32>
    %20 = vector.shape_cast %19 : vector<1x128x128xf32> to vector<128x128xf32>
    %cst_17 = arith.constant dense<0.000000e+00> : vector<8x128xf32>
    %21 = tpu.matmul %18, %20, %cst_17 {dimension_numbers = #tpu.dot_dimension_numbers<[1], [0], [0], [1], [0, 0, 1, 1], [], []>} : vector<8x128xf32>, vector<128x128xf32>, vector<8x128xf32> -> vector<8x128xf32>
    %c2_18 = arith.constant 2 : index
    %c0_19 = arith.constant 0 : index
    %c0_20 = arith.constant 0 : index
    %22 = vector.load %arg3[%c2_18, %c0_19, %c0_20] : memref<9x1x128xf32, #tpu.memory_space<vmem>>, vector<1x1x128xf32>
    %23 = vector.shape_cast %22 : vector<1x1x128xf32> to vector<1x128xf32>
    %24 = vector.broadcast %23 : vector<1x128xf32> to vector<8x128xf32>
    %25 = arith.addf %21, %24 : vector<8x128xf32>
    %cst_21 = arith.constant 0.000000e+00 : f32
    %26 = vector.broadcast %cst_21 : f32 to vector<8x128xf32>
    %27 = arith.maximumf %25, %26 : vector<8x128xf32>
    %c3 = arith.constant 3 : index
    %c0_22 = arith.constant 0 : index
    %c0_23 = arith.constant 0 : index
    %28 = vector.load %arg2[%c3, %c0_22, %c0_23] : memref<9x128x128xf32, #tpu.memory_space<vmem>>, vector<1x128x128xf32>
    %29 = vector.shape_cast %28 : vector<1x128x128xf32> to vector<128x128xf32>
    %cst_24 = arith.constant dense<0.000000e+00> : vector<8x128xf32>
    %30 = tpu.matmul %27, %29, %cst_24 {dimension_numbers = #tpu.dot_dimension_numbers<[1], [0], [0], [1], [0, 0, 1, 1], [], []>} : vector<8x128xf32>, vector<128x128xf32>, vector<8x128xf32> -> vector<8x128xf32>
    %c3_25 = arith.constant 3 : index
    %c0_26 = arith.constant 0 : index
    %c0_27 = arith.constant 0 : index
    %31 = vector.load %arg3[%c3_25, %c0_26, %c0_27] : memref<9x1x128xf32, #tpu.memory_space<vmem>>, vector<1x1x128xf32>
    %32 = vector.shape_cast %31 : vector<1x1x128xf32> to vector<1x128xf32>
    %33 = vector.broadcast %32 : vector<1x128xf32> to vector<8x128xf32>
    %34 = arith.addf %30, %33 : vector<8x128xf32>
    %cst_28 = arith.constant 0.000000e+00 : f32
    %35 = vector.broadcast %cst_28 : f32 to vector<8x128xf32>
    %36 = arith.maximumf %34, %35 : vector<8x128xf32>
    %c4 = arith.constant 4 : index
    %c0_29 = arith.constant 0 : index
    %c0_30 = arith.constant 0 : index
    %37 = vector.load %arg2[%c4, %c0_29, %c0_30] : memref<9x128x128xf32, #tpu.memory_space<vmem>>, vector<1x128x128xf32>
    %38 = vector.shape_cast %37 : vector<1x128x128xf32> to vector<128x128xf32>
    %cst_31 = arith.constant dense<0.000000e+00> : vector<8x128xf32>
    %39 = tpu.matmul %36, %38, %cst_31 {dimension_numbers = #tpu.dot_dimension_numbers<[1], [0], [0], [1], [0, 0, 1, 1], [], []>} : vector<8x128xf32>, vector<128x128xf32>, vector<8x128xf32> -> vector<8x128xf32>
    %c4_32 = arith.constant 4 : index
    %c0_33 = arith.constant 0 : index
    %c0_34 = arith.constant 0 : index
    %40 = vector.load %arg3[%c4_32, %c0_33, %c0_34] : memref<9x1x128xf32, #tpu.memory_space<vmem>>, vector<1x1x128xf32>
    %41 = vector.shape_cast %40 : vector<1x1x128xf32> to vector<1x128xf32>
    %42 = vector.broadcast %41 : vector<1x128xf32> to vector<8x128xf32>
    %43 = arith.addf %39, %42 : vector<8x128xf32>
    %cst_35 = arith.constant 0.000000e+00 : f32
    %44 = vector.broadcast %cst_35 : f32 to vector<8x128xf32>
    %45 = arith.maximumf %43, %44 : vector<8x128xf32>
    %c5 = arith.constant 5 : index
    %c0_36 = arith.constant 0 : index
    %c0_37 = arith.constant 0 : index
    %46 = vector.load %arg2[%c5, %c0_36, %c0_37] : memref<9x128x128xf32, #tpu.memory_space<vmem>>, vector<1x128x128xf32>
    %47 = vector.shape_cast %46 : vector<1x128x128xf32> to vector<128x128xf32>
    %cst_38 = arith.constant dense<0.000000e+00> : vector<8x128xf32>
    %48 = tpu.matmul %45, %47, %cst_38 {dimension_numbers = #tpu.dot_dimension_numbers<[1], [0], [0], [1], [0, 0, 1, 1], [], []>} : vector<8x128xf32>, vector<128x128xf32>, vector<8x128xf32> -> vector<8x128xf32>
    %c5_39 = arith.constant 5 : index
    %c0_40 = arith.constant 0 : index
    %c0_41 = arith.constant 0 : index
    %49 = vector.load %arg3[%c5_39, %c0_40, %c0_41] : memref<9x1x128xf32, #tpu.memory_space<vmem>>, vector<1x1x128xf32>
    %50 = vector.shape_cast %49 : vector<1x1x128xf32> to vector<1x128xf32>
    %51 = vector.broadcast %50 : vector<1x128xf32> to vector<8x128xf32>
    %52 = arith.addf %48, %51 : vector<8x128xf32>
    %cst_42 = arith.constant 0.000000e+00 : f32
    %53 = vector.broadcast %cst_42 : f32 to vector<8x128xf32>
    %54 = arith.maximumf %52, %53 : vector<8x128xf32>
    %c6 = arith.constant 6 : index
    %c0_43 = arith.constant 0 : index
    %c0_44 = arith.constant 0 : index
    %55 = vector.load %arg2[%c6, %c0_43, %c0_44] : memref<9x128x128xf32, #tpu.memory_space<vmem>>, vector<1x128x128xf32>
    %56 = vector.shape_cast %55 : vector<1x128x128xf32> to vector<128x128xf32>
    %cst_45 = arith.constant dense<0.000000e+00> : vector<8x128xf32>
    %57 = tpu.matmul %54, %56, %cst_45 {dimension_numbers = #tpu.dot_dimension_numbers<[1], [0], [0], [1], [0, 0, 1, 1], [], []>} : vector<8x128xf32>, vector<128x128xf32>, vector<8x128xf32> -> vector<8x128xf32>
    %c6_46 = arith.constant 6 : index
    %c0_47 = arith.constant 0 : index
    %c0_48 = arith.constant 0 : index
    %58 = vector.load %arg3[%c6_46, %c0_47, %c0_48] : memref<9x1x128xf32, #tpu.memory_space<vmem>>, vector<1x1x128xf32>
    %59 = vector.shape_cast %58 : vector<1x1x128xf32> to vector<1x128xf32>
    %60 = vector.broadcast %59 : vector<1x128xf32> to vector<8x128xf32>
    %61 = arith.addf %57, %60 : vector<8x128xf32>
    %cst_49 = arith.constant 0.000000e+00 : f32
    %62 = vector.broadcast %cst_49 : f32 to vector<8x128xf32>
    %63 = arith.maximumf %61, %62 : vector<8x128xf32>
    %c7 = arith.constant 7 : index
    %c0_50 = arith.constant 0 : index
    %c0_51 = arith.constant 0 : index
    %64 = vector.load %arg2[%c7, %c0_50, %c0_51] : memref<9x128x128xf32, #tpu.memory_space<vmem>>, vector<1x128x128xf32>
    %65 = vector.shape_cast %64 : vector<1x128x128xf32> to vector<128x128xf32>
    %cst_52 = arith.constant dense<0.000000e+00> : vector<8x128xf32>
    %66 = tpu.matmul %63, %65, %cst_52 {dimension_numbers = #tpu.dot_dimension_numbers<[1], [0], [0], [1], [0, 0, 1, 1], [], []>} : vector<8x128xf32>, vector<128x128xf32>, vector<8x128xf32> -> vector<8x128xf32>
    %c7_53 = arith.constant 7 : index
    %c0_54 = arith.constant 0 : index
    %c0_55 = arith.constant 0 : index
    %67 = vector.load %arg3[%c7_53, %c0_54, %c0_55] : memref<9x1x128xf32, #tpu.memory_space<vmem>>, vector<1x1x128xf32>
    %68 = vector.shape_cast %67 : vector<1x1x128xf32> to vector<1x128xf32>
    %69 = vector.broadcast %68 : vector<1x128xf32> to vector<8x128xf32>
    %70 = arith.addf %66, %69 : vector<8x128xf32>
    %cst_56 = arith.constant 0.000000e+00 : f32
    %71 = vector.broadcast %cst_56 : f32 to vector<8x128xf32>
    %72 = arith.maximumf %70, %71 : vector<8x128xf32>
    %c8 = arith.constant 8 : index
    %c0_57 = arith.constant 0 : index
    %c0_58 = arith.constant 0 : index
    %73 = vector.load %arg2[%c8, %c0_57, %c0_58] : memref<9x128x128xf32, #tpu.memory_space<vmem>>, vector<1x128x128xf32>
    %74 = vector.shape_cast %73 : vector<1x128x128xf32> to vector<128x128xf32>
    %cst_59 = arith.constant dense<0.000000e+00> : vector<8x128xf32>
    %75 = tpu.matmul %72, %74, %cst_59 {dimension_numbers = #tpu.dot_dimension_numbers<[1], [0], [0], [1], [0, 0, 1, 1], [], []>} : vector<8x128xf32>, vector<128x128xf32>, vector<8x128xf32> -> vector<8x128xf32>
    %c8_60 = arith.constant 8 : index
    %c0_61 = arith.constant 0 : index
    %c0_62 = arith.constant 0 : index
    %76 = vector.load %arg3[%c8_60, %c0_61, %c0_62] : memref<9x1x128xf32, #tpu.memory_space<vmem>>, vector<1x1x128xf32>
    %77 = vector.shape_cast %76 : vector<1x1x128xf32> to vector<1x128xf32>
    %78 = vector.broadcast %77 : vector<1x128xf32> to vector<8x128xf32>
    %79 = arith.addf %75, %78 : vector<8x128xf32>
    %c0_63 = arith.constant 0 : index
    %c0_64 = arith.constant 0 : index
    %80 = vector.load %arg4[%c0_63, %c0_64] : memref<8x128xf32, #tpu.memory_space<vmem>>, vector<8x128xf32>
    tpu.vector_store %arg4[%c0_63, %c0_64], %79 {strides = array<i32>} : memref<8x128xf32, #tpu.memory_space<vmem>>, vector<8x128xf32>,
    return
  }
  func.func @transform_0(%arg0: i32) -> (i32, i32) {
    %c0_i32 = arith.constant 0 : i32
    %c0_i32_0 = arith.constant 0 : i32
    return %arg0, %c0_i32 : i32, i32
  }
  func.func @transform_1(%arg0: i32) -> (i32, i32, i32) {
    %c0_i32 = arith.constant 0 : i32
    %c0_i32_0 = arith.constant 0 : i32
    %c0_i32_1 = arith.constant 0 : i32
    %c0_i32_2 = arith.constant 0 : i32
    return %c0_i32, %c0_i32_0, %c0_i32_1 : i32, i32, i32
  }
  func.func @transform_2(%arg0: i32) -> (i32, i32, i32) {
    %c0_i32 = arith.constant 0 : i32
    %c0_i32_0 = arith.constant 0 : i32
    %c0_i32_1 = arith.constant 0 : i32
    %c0_i32_2 = arith.constant 0 : i32
    return %c0_i32, %c0_i32_0, %c0_i32_1 : i32, i32, i32
  }
  func.func @transform_3(%arg0: i32) -> (i32, i32) {
    %c0_i32 = arith.constant 0 : i32
    %c0_i32_0 = arith.constant 0 : i32
    return %arg0, %c0_i32 : i32, i32
  }
}

</mosaic_0001>

<bundles_post_ra>
// kernel: mlp_forward.1
= control target key start
LH: loop header
LB: loop body
LE: loop exit
PB: predicated region body
PF: predicated region fallthrough
CT: control target
= control target key end

     0   :  { %8 = vsyncpa [#allocation3], 0  ;;  %s1408_s12 = smov [#allocation2]   ;;  %s1631_s0 = inlined_call_operand.vmem [shape: f32[8,128], index: 0, kind: input, shape index: {}]   ;;  %s1632_s1 = inlined_call_operand.hbm [shape: f32[9,128,128], index: 1, kind: input, shape index: {}]   ;;  %s1633_s2 = inlined_call_operand.vmem [shape: f32[9,1,128], index: 2, kind: input, shape index: {}]   ;;  %s1634_s3 = inlined_call_operand.vmem [shape: f32[8,128], index: 3, kind: output, shape index: {}]  }
   0x1   :  { %s16_s13 = sshll.u32 %s1408_s12, 4  ;;  %s17_s13 = int_to_ptr.vmem [resolvable:$true] %s16_s13 }
   0x2   :  { %s1394_s14 = scalar_lea.vmem %s17_s13, 18432  ;;  %p1399_p1 = scmp.lt.s32.totalorder %s17_s13, %s17_s13 }
   0x3   :  { %p1395_p0 = scmp.ne.s32.totalorder %s17_s13, %s1394_s14  ;;  %p1400_p2 = scmp.lt.s32.totalorder %s1394_s14, %s1394_s14 }
   0x5   :  { %p1401_p3 = por %p1400_p2, %p1399_p1 }
   0x7   :  { %p1402_p4 = pnand %p1401_p3, %p1395_p0 }
   0x9   :  { %1405 = shalt.err (!%p1402_p4)
}
   0xa   :  { %s1409_s15 = smov 128   ;;  %s1410_s16 = smov 8  }
   0xb   :  { %22 = dma.hbm_to_vmem [thread:$0]  %s1632_s1, 18432, %s17_s13, [#allocation3], %s1409_s15, %s1409_s15, %s1410_s16  }
   0xc   :  { %1406 = dma.done.wait [#allocation3], 18432  }
   0xd   :  { %1407 = vsyncadd [#allocation3], 4294948864  ;;  %v1411_v0 = vmov 0.0   ;;  %vm1412_vm0 = vmmov 0   ;;  %v44_v1 = vld [vmem:[#allocation2 + $0x78] sm:$0xff]  ;;  %v43_v2 = vld [vmem:[#allocation2 + $0x70] sm:$0xff] }
   0xe   :  { %1066 = vmatprep.subr.mxu0 %v1411_v0  ;;  %1098 = vmatprep.mubr.msk.f32.mxu0 %vm1412_vm0, %v1411_v0  ;;  %v42_v3 = vld [vmem:[#allocation2 + $0x68] sm:$0xff]  ;;  %v41_v4 = vld [vmem:[#allocation2 + $0x60] sm:$0xff]  ;;  %v139_v5 = vld [vmem:[#allocation2 + $0xf8] sm:$0xff] }
   0xf   :  { %1101 = vmatprep.subr.mxu1 %v1411_v0  ;;  %1133 = vmatprep.mubr.msk.f32.mxu1 %vm1412_vm0, %v1411_v0  ;;  %v40_v6 = vld [vmem:[#allocation2 + $0x58] sm:$0xff]  ;;  %v138_v7 = vld [vmem:[#allocation2 + $0xf0] sm:$0xff]  ;;  %v137_v8 = vld [vmem:[#allocation2 + $0xe8] sm:$0xff] }
  0x10   :  { %1067 = vmatpush3.msra.mxu0 %v44_v1  ;;  %1102 = vmatpush3.msra.mxu1 %v139_v5  ;;  %v39_v9 = vld [vmem:[#allocation2 + $0x50] sm:$0xff]  ;;  %v136_v10 = vld [vmem:[#allocation2 + $0xe0] sm:$0xff]  ;;  %v38_v11 = vld [vmem:[#allocation2 + $0x48] sm:$0xff] }
  0x11   :  { %1068 = vmatprep.subr.mxu0 %v1411_v0  ;;  %1103 = vmatprep.subr.mxu1 %v1411_v0  ;;  %v135_v12 = vld [vmem:[#allocation2 + $0xd8] sm:$0xff]  ;;  %v37_v13 = vld [vmem:[#allocation2 + $0x40] sm:$0xff]  ;;  %v134_v14 = vld [vmem:[#allocation2 + $0xd0] sm:$0xff] }
  0x12   :  { %1069 = vmatpush3.msra.mxu0 %v43_v2  ;;  %1104 = vmatpush3.msra.mxu1 %v138_v7  ;;  %v36_v15 = vld [vmem:[#allocation2 + $0x38] sm:$0xff]  ;;  %v133_v16 = vld [vmem:[#allocation2 + $0xc8] sm:$0xff]  ;;  %v35_v17 = vld [vmem:[#allocation2 + $0x30] sm:$0xff] }
  0x13   :  { %1070 = vmatprep.subr.mxu0 %v1411_v0  ;;  %1105 = vmatprep.subr.mxu1 %v1411_v0  ;;  %v132_v18 = vld [vmem:[#allocation2 + $0xc0] sm:$0xff]  ;;  %v34_v19 = vld [vmem:[#allocation2 + $0x28] sm:$0xff]  ;;  %v131_v20 = vld [vmem:[#allocation2 + $0xb8] sm:$0xff] }
  0x14   :  { %1071 = vmatpush3.msra.mxu0 %v42_v3  ;;  %1106 = vmatpush3.msra.mxu1 %v137_v8  ;;  %v33_v21 = vld [vmem:[#allocation2 + $0x20] sm:$0xff]  ;;  %v130_v22 = vld [vmem:[#allocation2 + $0xb0] sm:$0xff]  ;;  %v32_v23 = vld [vmem:[#allocation2 + $0x18] sm:$0xff] }
  0x15   :  { %1072 = vmatprep.subr.mxu0 %v1411_v0  ;;  %1107 = vmatprep.subr.mxu1 %v1411_v0  ;;  %v129_v24 = vld [vmem:[#allocation2 + $0xa8] sm:$0xff]  ;;  %v31_v25 = vld [vmem:[#allocation2 + $0x10] sm:$0xff]  ;;  %v128_v26 = vld [vmem:[#allocation2 + $0xa0] sm:$0xff] }
  0x16   :  { %1073 = vmatpush3.msra.mxu0 %v41_v4  ;;  %1108 = vmatpush3.msra.mxu1 %v136_v10  ;;  %v30_v27 = vld [vmem:[#allocation2 + $0x8] sm:$0xff]  ;;  %v127_v28 = vld [vmem:[#allocation2 + $0x98] sm:$0xff]  ;;  %v29_v29 = vld [vmem:[#allocation2] sm:$0xff] }
  0x17   :  { %1074 = vmatprep.subr.mxu0 %v1411_v0  ;;  %1109 = vmatprep.subr.mxu1 %v1411_v0  ;;  %v28_v30 = vld [vmem:[%s1631_s0] sm:$0xff]  ;;  %v126_v31 = vld [vmem:[#allocation2 + $0x90] sm:$0xff]  ;;  %v125_v32 = vld [vmem:[#allocation2 + $0x88] sm:$0xff] }
  0x18   :  { %1075 = vmatpush3.msra.mxu0 %v40_v6  ;;  %1110 = vmatpush3.msra.mxu1 %v135_v12  ;;  %v124_v33 = vld [vmem:[#allocation2 + $0x80] sm:$0xff]  ;;  %v235_v34 = vld [vmem:[#allocation2 + $0x178] sm:$0xff]  ;;  %v234_v35 = vld [vmem:[#allocation2 + $0x170] sm:$0xff] }
  0x19   :  { %1076 = vmatprep.subr.mxu0 %v1411_v0  ;;  %1111 = vmatprep.subr.mxu1 %v1411_v0  ;;  %v233_v36 = vld [vmem:[#allocation2 + $0x168] sm:$0xff]  ;;  %v232_v37 = vld [vmem:[#allocation2 + $0x160] sm:$0xff]  ;;  %v231_v38 = vld [vmem:[#allocation2 + $0x158] sm:$0xff] }
  0x1a   :  { %1077 = vmatpush3.msra.mxu0 %v39_v9  ;;  %1112 = vmatpush3.msra.mxu1 %v134_v14  ;;  %v230_v39 = vld [vmem:[#allocation2 + $0x150] sm:$0xff]  ;;  %v229_v40 = vld [vmem:[#allocation2 + $0x148] sm:$0xff]  ;;  %v228_v41 = vld [vmem:[#allocation2 + $0x140] sm:$0xff] }
  0x1b   :  { %1078 = vmatprep.subr.mxu0 %v1411_v0  ;;  %1113 = vmatprep.subr.mxu1 %v1411_v0  ;;  %v227_v42 = vld [vmem:[#allocation2 + $0x138] sm:$0xff]  ;;  %v226_v43 = vld [vmem:[#allocation2 + $0x130] sm:$0xff]  ;;  %v225_v44 = vld [vmem:[#allocation2 + $0x128] sm:$0xff] }
  0x1c   :  { %1079 = vmatpush3.msra.mxu0 %v38_v11  ;;  %1114 = vmatpush3.msra.mxu1 %v133_v16  ;;  %v224_v45 = vld [vmem:[#allocation2 + $0x120] sm:$0xff]  ;;  %v223_v46 = vld [vmem:[#allocation2 + $0x118] sm:$0xff]  ;;  %v222_v52 = vld [vmem:[#allocation2 + $0x110] sm:$0xff] }
  0x1d   :  { %1080 = vmatprep.subr.mxu0 %v1411_v0  ;;  %1115 = vmatprep.subr.mxu1 %v1411_v0  ;;  %v896_v47 = vld [vmem:[%s1633_s2] ss:$0 sm:$0xff]  ;;  %v221_v53 = vld [vmem:[#allocation2 + $0x108] sm:$0xff]  ;;  %v331_v55 = vld [vmem:[#allocation2 + $0x1f8] sm:$0xff] }
  0x1e   :  { %1081 = vmatpush3.msra.mxu0 %v37_v13  ;;  %1116 = vmatpush3.msra.mxu1 %v132_v18  ;;  %v220_v54 = vld [vmem:[#allocation2 + $0x100] sm:$0xff]  ;;  %v330_v56 = vld [vmem:[#allocation2 + $0x1f0] sm:$0xff]  ;;  %v329_v57 = vld [vmem:[#allocation2 + $0x1e8] sm:$0xff] }
  0x1f   :  { %1082 = vmatprep.subr.mxu0 %v1411_v0  ;;  %1117 = vmatprep.subr.mxu1 %v1411_v0  ;;  %v328_v58 = vld [vmem:[#allocation2 + $0x1e0] sm:$0xff]  ;;  %v327_v59 = vld [vmem:[#allocation2 + $0x1d8] sm:$0xff]  ;;  %v326_v60 = vld [vmem:[#allocation2 + $0x1d0] sm:$0xff] }
  0x20   :  { %1083 = vmatpush3.msra.mxu0 %v36_v15  ;;  %1118 = vmatpush3.msra.mxu1 %v131_v20  ;;  %v325_v61 = vld [vmem:[#allocation2 + $0x1c8] sm:$0xff]  ;;  %v324_v62 = vld [vmem:[#allocation2 + $0x1c0] sm:$0xff]  ;;  %v323_v63 = vld [vmem:[#allocation2 + $0x1b8] sm:$0xff] }
  0x21   :  { %1084 = vmatprep.subr.mxu0 %v1411_v0  ;;  %1119 = vmatprep.subr.mxu1 %v1411_v0  ;;  %v322_v1 = vld [vmem:[#allocation2 + $0x1b0] sm:$0xff]  ;;  %v321_v2 = vld [vmem:[#allocation2 + $0x1a8] sm:$0xff]  ;;  %v320_v3 = vld [vmem:[#allocation2 + $0x1a0] sm:$0xff] }
  0x22   :  { %1085 = vmatpush3.msra.mxu0 %v35_v17  ;;  %1120 = vmatpush3.msra.mxu1 %v130_v22  ;;  %v319_v4 = vld [vmem:[#allocation2 + $0x198] sm:$0xff]  ;;  %v898_v5 = vld [vmem:[%s1633_s2 + $0x1] ss:$0 sm:$0xff]  ;;  %v318_v10 = vld [vmem:[#allocation2 + $0x190] sm:$0xff] }
  0x23   :  { %1086 = vmatprep.subr.mxu0 %v1411_v0  ;;  %1121 = vmatprep.subr.mxu1 %v1411_v0  ;;  %v317_v11 = vld [vmem:[#allocation2 + $0x188] sm:$0xff]  ;;  %v316_v12 = vld [vmem:[#allocation2 + $0x180] sm:$0xff]  ;;  %v427_v13 = vld [vmem:[#allocation2 + $0x278] sm:$0xff] }
  0x24   :  { %1087 = vmatpush3.msra.mxu0 %v34_v19  ;;  %1122 = vmatpush3.msra.mxu1 %v129_v24  ;;  %v426_v14 = vld [vmem:[#allocation2 + $0x270] sm:$0xff]  ;;  %v425_v15 = vld [vmem:[#allocation2 + $0x268] sm:$0xff]  ;;  %v424_v16 = vld [vmem:[#allocation2 + $0x260] sm:$0xff] }
  0x25   :  { %1088 = vmatprep.subr.mxu0 %v1411_v0  ;;  %1123 = vmatprep.subr.mxu1 %v1411_v0  ;;  %v423_v17 = vld [vmem:[#allocation2 + $0x258] sm:$0xff]  ;;  %v422_v18 = vld [vmem:[#allocation2 + $0x250] sm:$0xff]  ;;  %v421_v19 = vld [vmem:[#allocation2 + $0x248] sm:$0xff] }
  0x26   :  { %1089 = vmatpush3.msra.mxu0 %v33_v21  ;;  %1124 = vmatpush3.msra.mxu1 %v128_v26  ;;  %v420_v20 = vld [vmem:[#allocation2 + $0x240] sm:$0xff]  ;;  %v419_v21 = vld [vmem:[#allocation2 + $0x238] sm:$0xff]  ;;  %v418_v22 = vld [vmem:[#allocation2 + $0x230] sm:$0xff] }
  0x27   :  { %1090 = vmatprep.subr.mxu0 %v1411_v0  ;;  %1125 = vmatprep.subr.mxu1 %v1411_v0  ;;  %v416_v24 = vld [vmem:[#allocation2 + $0x220] sm:$0xff] }
  0x28   :  { %1091 = vmatpush3.msra.mxu0 %v32_v23  ;;  %1126 = vmatpush3.msra.mxu1 %v127_v28  ;;  %v417_v23 = vld [vmem:[#allocation2 + $0x228] sm:$0xff]  ;;  %v900_v26 = vld [vmem:[%s1633_s2 + $0x2] ss:$0 sm:$0xff] }
  0x29   :  { %1092 = vmatprep.subr.mxu0 %v1411_v0  ;;  %1127 = vmatprep.subr.mxu1 %v1411_v0 }
  0x2a   :  { %1093 = vmatpush3.msra.mxu0 %v31_v25  ;;  %1128 = vmatpush3.msra.mxu1 %v126_v31  ;;  %v415_v25 = vld [vmem:[#allocation2 + $0x218] sm:$0xff]  ;;  %v414_v31 = vld [vmem:[#allocation2 + $0x210] sm:$0xff] }
  0x2b   :  { %1094 = vmatprep.subr.mxu0 %v1411_v0  ;;  %1129 = vmatprep.subr.mxu1 %v1411_v0 }
  0x2c   :  { %1095 = vmatpush3.msra.mxu0 %v30_v27  ;;  %1130 = vmatpush3.msra.mxu1 %v125_v32  ;;  %v413_v32 = vld [vmem:[#allocation2 + $0x208] sm:$0xff] }
  0x2d   :  { %1096 = vmatprep.subr.mxu0 %v1411_v0  ;;  %1131 = vmatprep.subr.mxu1 %v1411_v0 }
  0x2e   :  { %1097 = vmatpush3.msra.mxu0 %v29_v29  ;;  %1132 = vmatpush3.msra.mxu1 %v124_v33  ;;  %v412_v33 = vld [vmem:[#allocation2 + $0x200] sm:$0xff] }
  0x2f   :  { %1099 = vmatmul.mubr.f32.vlgmr.msra.gmra.mxu0 %v28_v30  ;;  %1136 = vmatprep.subr.mxu0 %v1411_v0 }
  0x30   :  { %1168 = vmatprep.mubr.msk.f32.mxu0 %vm1412_vm0, %v1411_v0  ;;  %1171 = vmatprep.subr.mxu1 %v1411_v0 }
  0x31   :  { %1137 = vmatpush3.msra.mxu0 %v235_v34  ;;  %v523_v34 = vld [vmem:[#allocation2 + $0x2f8] sm:$0xff] }
  0x32   :  { %1138 = vmatprep.subr.mxu0 %v1411_v0 }
  0x33   :  { %1139 = vmatpush3.msra.mxu0 %v234_v35  ;;  %v522_v35 = vld [vmem:[#allocation2 + $0x2f0] sm:$0xff] }
  0x34   :  { %1140 = vmatprep.subr.mxu0 %v1411_v0 }
  0x35   :  { %1141 = vmatpush3.msra.mxu0 %v233_v36  ;;  %v521_v36 = vld [vmem:[#allocation2 + $0x2e8] sm:$0xff] }
  0x36   :  { %1142 = vmatprep.subr.mxu0 %v1411_v0 }
  0x37   :  { %1143 = vmatpush3.msra.mxu0 %v232_v37  ;;  %v520_v37 = vld [vmem:[#allocation2 + $0x2e0] sm:$0xff] }
  0x38   :  { %1144 = vmatprep.subr.mxu0 %v1411_v0 }
  0x39   :  { %1145 = vmatpush3.msra.mxu0 %v231_v38  ;;  %v519_v38 = vld [vmem:[#allocation2 + $0x2d8] sm:$0xff] }
  0x3a   :  { %1146 = vmatprep.subr.mxu0 %v1411_v0 }
  0x3b   :  { %1147 = vmatpush3.msra.mxu0 %v230_v39  ;;  %v518_v39 = vld [vmem:[#allocation2 + $0x2d0] sm:$0xff] }
  0x3c   :  { %1148 = vmatprep.subr.mxu0 %v1411_v0 }
  0x3d   :  { %1149 = vmatpush3.msra.mxu0 %v229_v40  ;;  %v517_v40 = vld [vmem:[#allocation2 + $0x2c8] sm:$0xff] }
  0x3e   :  { %1150 = vmatprep.subr.mxu0 %v1411_v0 }
  0x3f   :  { %1151 = vmatpush3.msra.mxu0 %v228_v41  ;;  %v516_v41 = vld [vmem:[#allocation2 + $0x2c0] sm:$0xff] }
  0x40   :  { %1152 = vmatprep.subr.mxu0 %v1411_v0 }
  0x41   :  { %1153 = vmatpush3.msra.mxu0 %v227_v42  ;;  %v515_v42 = vld [vmem:[#allocation2 + $0x2b8] sm:$0xff] }
  0x42   :  { %1154 = vmatprep.subr.mxu0 %v1411_v0 }
  0x43   :  { %1155 = vmatpush3.msra.mxu0 %v226_v43  ;;  %v514_v43 = vld [vmem:[#allocation2 + $0x2b0] sm:$0xff] }
  0x44   :  { %1156 = vmatprep.subr.mxu0 %v1411_v0 }
  0x45   :  { %1157 = vmatpush3.msra.mxu0 %v225_v44  ;;  %v513_v44 = vld [vmem:[#allocation2 + $0x2a8] sm:$0xff] }
  0x46   :  { %1158 = vmatprep.subr.mxu0 %v1411_v0 }
  0x47   :  { %1159 = vmatpush3.msra.mxu0 %v224_v45  ;;  %v512_v45 = vld [vmem:[#allocation2 + $0x2a0] sm:$0xff] }
  0x48   :  { %1160 = vmatprep.subr.mxu0 %v1411_v0 }
  0x49   :  { %1161 = vmatpush3.msra.mxu0 %v223_v46  ;;  %v511_v46 = vld [vmem:[#allocation2 + $0x298] sm:$0xff] }
  0x4a   :  { %1162 = vmatprep.subr.mxu0 %v1411_v0 }
  0x4b   :  { %1163 = vmatpush3.msra.mxu0 %v222_v52  ;;  %v510_v52 = vld [vmem:[#allocation2 + $0x290] sm:$0xff] }
  0x4c   :  { %1164 = vmatprep.subr.mxu0 %v1411_v0 }
  0x4d   :  { %1165 = vmatpush3.msra.mxu0 %v221_v53  ;;  %v509_v53 = vld [vmem:[#allocation2 + $0x288] sm:$0xff] }
  0x4e   :  { %1166 = vmatprep.subr.mxu0 %v1411_v0 }
  0x4f   :  { %1167 = vmatpush3.msra.mxu0 %v220_v54  ;;  %v508_v54 = vld [vmem:[#allocation2 + $0x280] sm:$0xff] }
  0x50   :  { %1206 = vmatprep.subr.mxu0 %v1411_v0 }
  0xef   :  { %v118_v48 = vpop.f32.mrf.mxu0 }
  0xf0   :  { %v119_v49 = vadd.f32 %v896_v47, %v118_v48  ;;  %v902_v47 = vld [vmem:[%s1633_s2 + $0x3] ss:$0 sm:$0xff] }
  0xf1   :  { %v1100_v50 = vpop.f32.mrf.mxu0 }
  0xf2   :  { %v122_v51 = vmax.f32 %v119_v49, 0.0 }
  0xf4   :  { %1134 = vmatmul.mubr.f32.vlgmr.msra.gmra.mxu1 %v122_v51 }
  0xf5   :  { %1203 = vmatprep.mubr.msk.f32.mxu1 %vm1412_vm0, %v1411_v0  ;;  %1172 = vmatpush3.msra.mxu1 %v331_v55  ;;  %v619_v55 = vld [vmem:[#allocation2 + $0x378] sm:$0xff] }
  0xf6   :  { %1173 = vmatprep.subr.mxu1 %v1411_v0 }
  0xf7   :  { %1174 = vmatpush3.msra.mxu1 %v330_v56  ;;  %v618_v56 = vld [vmem:[#allocation2 + $0x370] sm:$0xff] }
  0xf8   :  { %1175 = vmatprep.subr.mxu1 %v1411_v0 }
  0xf9   :  { %1176 = vmatpush3.msra.mxu1 %v329_v57  ;;  %v617_v57 = vld [vmem:[#allocation2 + $0x368] sm:$0xff] }
  0xfa   :  { %1177 = vmatprep.subr.mxu1 %v1411_v0 }
  0xfb   :  { %1178 = vmatpush3.msra.mxu1 %v328_v58  ;;  %v616_v58 = vld [vmem:[#allocation2 + $0x360] sm:$0xff] }
  0xfc   :  { %1179 = vmatprep.subr.mxu1 %v1411_v0 }
  0xfd   :  { %1180 = vmatpush3.msra.mxu1 %v327_v59  ;;  %v615_v59 = vld [vmem:[#allocation2 + $0x358] sm:$0xff] }
  0xfe   :  { %1181 = vmatprep.subr.mxu1 %v1411_v0 }
  0xff   :  { %1182 = vmatpush3.msra.mxu1 %v326_v60  ;;  %v614_v60 = vld [vmem:[#allocation2 + $0x350] sm:$0xff] }
 0x100   :  { %1183 = vmatprep.subr.mxu1 %v1411_v0 }
 0x101   :  { %1184 = vmatpush3.msra.mxu1 %v325_v61  ;;  %v613_v61 = vld [vmem:[#allocation2 + $0x348] sm:$0xff] }
 0x102   :  { %1185 = vmatprep.subr.mxu1 %v1411_v0 }
 0x103   :  { %1186 = vmatpush3.msra.mxu1 %v324_v62  ;;  %v612_v62 = vld [vmem:[#allocation2 + $0x340] sm:$0xff] }
 0x104   :  { %1187 = vmatprep.subr.mxu1 %v1411_v0 }
 0x105   :  { %1188 = vmatpush3.msra.mxu1 %v323_v63  ;;  %v611_v63 = vld [vmem:[#allocation2 + $0x338] sm:$0xff] }
 0x106   :  { %1189 = vmatprep.subr.mxu1 %v1411_v0 }
 0x107   :  { %1190 = vmatpush3.msra.mxu1 %v322_v1  ;;  %v610_v1 = vld [vmem:[#allocation2 + $0x330] sm:$0xff] }
 0x108   :  { %1191 = vmatprep.subr.mxu1 %v1411_v0 }
 0x109   :  { %1192 = vmatpush3.msra.mxu1 %v321_v2  ;;  %v609_v2 = vld [vmem:[#allocation2 + $0x328] sm:$0xff] }
 0x10a   :  { %1193 = vmatprep.subr.mxu1 %v1411_v0 }
 0x10b   :  { %1194 = vmatpush3.msra.mxu1 %v320_v3  ;;  %v608_v3 = vld [vmem:[#allocation2 + $0x320] sm:$0xff] }
 0x10c   :  { %1195 = vmatprep.subr.mxu1 %v1411_v0 }
 0x10d   :  { %1196 = vmatpush3.msra.mxu1 %v319_v4  ;;  %v607_v4 = vld [vmem:[#allocation2 + $0x318] sm:$0xff] }
 0x10e   :  { %1197 = vmatprep.subr.mxu1 %v1411_v0 }
 0x10f   :  { %1198 = vmatpush3.msra.mxu1 %v318_v10  ;;  %v606_v10 = vld [vmem:[#allocation2 + $0x310] sm:$0xff] }
 0x110   :  { %1199 = vmatprep.subr.mxu1 %v1411_v0 }
 0x111   :  { %1200 = vmatpush3.msra.mxu1 %v317_v11  ;;  %v605_v11 = vld [vmem:[#allocation2 + $0x308] sm:$0xff] }
 0x112   :  { %1201 = vmatprep.subr.mxu1 %v1411_v0 }
 0x113   :  { %1202 = vmatpush3.msra.mxu1 %v316_v12  ;;  %v604_v12 = vld [vmem:[#allocation2 + $0x300] sm:$0xff] }
 0x114   :  { %1241 = vmatprep.subr.mxu1 %v1411_v0 }
 0x1b4   :  { %v214_v6 = vpop.f32.mrf.mxu1 }
 0x1b5   :  { %v215_v7 = vadd.f32 %v898_v5, %v214_v6  ;;  %v904_v5 = vld [vmem:[%s1633_s2 + $0x4] ss:$0 sm:$0xff] }
 0x1b6   :  { %v1135_v8 = vpop.f32.mrf.mxu1 }
 0x1b7   :  { %v218_v9 = vmax.f32 %v215_v7, 0.0 }
 0x1b9   :  { %1169 = vmatmul.mubr.f32.vlgmr.msra.gmra.mxu0 %v218_v9 }
 0x1ba   :  { %1238 = vmatprep.mubr.msk.f32.mxu0 %vm1412_vm0, %v1411_v0  ;;  %1207 = vmatpush3.msra.mxu0 %v427_v13  ;;  %v715_v13 = vld [vmem:[#allocation2 + $0x3f8] sm:$0xff] }
 0x1bb   :  { %1208 = vmatprep.subr.mxu0 %v1411_v0 }
 0x1bc   :  { %1209 = vmatpush3.msra.mxu0 %v426_v14  ;;  %v714_v14 = vld [vmem:[#allocation2 + $0x3f0] sm:$0xff] }
 0x1bd   :  { %1210 = vmatprep.subr.mxu0 %v1411_v0 }
 0x1be   :  { %1211 = vmatpush3.msra.mxu0 %v425_v15  ;;  %v713_v15 = vld [vmem:[#allocation2 + $0x3e8] sm:$0xff] }
 0x1bf   :  { %1212 = vmatprep.subr.mxu0 %v1411_v0 }
 0x1c0   :  { %1213 = vmatpush3.msra.mxu0 %v424_v16  ;;  %v712_v16 = vld [vmem:[#allocation2 + $0x3e0] sm:$0xff] }
 0x1c1   :  { %1214 = vmatprep.subr.mxu0 %v1411_v0 }
 0x1c2   :  { %1215 = vmatpush3.msra.mxu0 %v423_v17  ;;  %v711_v17 = vld [vmem:[#allocation2 + $0x3d8] sm:$0xff] }
 0x1c3   :  { %1216 = vmatprep.subr.mxu0 %v1411_v0 }
 0x1c4   :  { %1217 = vmatpush3.msra.mxu0 %v422_v18  ;;  %v710_v18 = vld [vmem:[#allocation2 + $0x3d0] sm:$0xff] }
 0x1c5   :  { %1218 = vmatprep.subr.mxu0 %v1411_v0 }
 0x1c6   :  { %1219 = vmatpush3.msra.mxu0 %v421_v19  ;;  %v709_v19 = vld [vmem:[#allocation2 + $0x3c8] sm:$0xff] }
 0x1c7   :  { %1220 = vmatprep.subr.mxu0 %v1411_v0 }
 0x1c8   :  { %1221 = vmatpush3.msra.mxu0 %v420_v20  ;;  %v708_v20 = vld [vmem:[#allocation2 + $0x3c0] sm:$0xff] }
 0x1c9   :  { %1222 = vmatprep.subr.mxu0 %v1411_v0 }
 0x1ca   :  { %1223 = vmatpush3.msra.mxu0 %v419_v21  ;;  %v707_v21 = vld [vmem:[#allocation2 + $0x3b8] sm:$0xff] }
 0x1cb   :  { %1224 = vmatprep.subr.mxu0 %v1411_v0 }
 0x1cc   :  { %1225 = vmatpush3.msra.mxu0 %v418_v22  ;;  %v706_v22 = vld [vmem:[#allocation2 + $0x3b0] sm:$0xff] }
 0x1cd   :  { %1226 = vmatprep.subr.mxu0 %v1411_v0 }
 0x1ce   :  { %1227 = vmatpush3.msra.mxu0 %v417_v23  ;;  %v705_v23 = vld [vmem:[#allocation2 + $0x3a8] sm:$0xff] }
 0x1cf   :  { %1228 = vmatprep.subr.mxu0 %v1411_v0 }
 0x1d0   :  { %1229 = vmatpush3.msra.mxu0 %v416_v24  ;;  %v704_v24 = vld [vmem:[#allocation2 + $0x3a0] sm:$0xff] }
 0x1d1   :  { %1230 = vmatprep.subr.mxu0 %v1411_v0 }
 0x1d2   :  { %1231 = vmatpush3.msra.mxu0 %v415_v25  ;;  %v703_v25 = vld [vmem:[#allocation2 + $0x398] sm:$0xff] }
 0x1d3   :  { %1232 = vmatprep.subr.mxu0 %v1411_v0 }
 0x1d4   :  { %1233 = vmatpush3.msra.mxu0 %v414_v31  ;;  %v702_v31 = vld [vmem:[#allocation2 + $0x390] sm:$0xff] }
 0x1d5   :  { %1234 = vmatprep.subr.mxu0 %v1411_v0 }
 0x1d6   :  { %1235 = vmatpush3.msra.mxu0 %v413_v32  ;;  %v701_v32 = vld [vmem:[#allocation2 + $0x388] sm:$0xff] }
 0x1d7   :  { %1236 = vmatprep.subr.mxu0 %v1411_v0 }
 0x1d8   :  { %1237 = vmatpush3.msra.mxu0 %v412_v33  ;;  %v700_v33 = vld [vmem:[#allocation2 + $0x380] sm:$0xff] }
 0x1d9   :  { %1276 = vmatprep.subr.mxu0 %v1411_v0 }
 0x279   :  { %v310_v27 = vpop.f32.mrf.mxu0 }
 0x27a   :  { %v311_v28 = vadd.f32 %v900_v26, %v310_v27  ;;  %v906_v26 = vld [vmem:[%s1633_s2 + $0x5] ss:$0 sm:$0xff] }
 0x27b   :  { %v1170_v29 = vpop.f32.mrf.mxu0 }
 0x27c   :  { %v314_v30 = vmax.f32 %v311_v28, 0.0 }
 0x27e   :  { %1204 = vmatmul.mubr.f32.vlgmr.msra.gmra.mxu1 %v314_v30 }
 0x27f   :  { %1273 = vmatprep.mubr.msk.f32.mxu1 %vm1412_vm0, %v1411_v0  ;;  %1242 = vmatpush3.msra.mxu1 %v523_v34  ;;  %v811_v34 = vld [vmem:[#allocation2 + $0x478] sm:$0xff] }
 0x280   :  { %1243 = vmatprep.subr.mxu1 %v1411_v0 }
 0x281   :  { %1244 = vmatpush3.msra.mxu1 %v522_v35  ;;  %v810_v35 = vld [vmem:[#allocation2 + $0x470] sm:$0xff] }
 0x282   :  { %1245 = vmatprep.subr.mxu1 %v1411_v0 }
 0x283   :  { %1246 = vmatpush3.msra.mxu1 %v521_v36  ;;  %v809_v36 = vld [vmem:[#allocation2 + $0x468] sm:$0xff] }
 0x284   :  { %1247 = vmatprep.subr.mxu1 %v1411_v0 }
 0x285   :  { %1248 = vmatpush3.msra.mxu1 %v520_v37  ;;  %v808_v37 = vld [vmem:[#allocation2 + $0x460] sm:$0xff] }
 0x286   :  { %1249 = vmatprep.subr.mxu1 %v1411_v0 }
 0x287   :  { %1250 = vmatpush3.msra.mxu1 %v519_v38  ;;  %v807_v38 = vld [vmem:[#allocation2 + $0x458] sm:$0xff] }
 0x288   :  { %1251 = vmatprep.subr.mxu1 %v1411_v0 }
 0x289   :  { %1252 = vmatpush3.msra.mxu1 %v518_v39  ;;  %v806_v39 = vld [vmem:[#allocation2 + $0x450] sm:$0xff] }
 0x28a   :  { %1253 = vmatprep.subr.mxu1 %v1411_v0 }
 0x28b   :  { %1254 = vmatpush3.msra.mxu1 %v517_v40  ;;  %v805_v40 = vld [vmem:[#allocation2 + $0x448] sm:$0xff] }
 0x28c   :  { %1255 = vmatprep.subr.mxu1 %v1411_v0 }
 0x28d   :  { %1256 = vmatpush3.msra.mxu1 %v516_v41  ;;  %v804_v41 = vld [vmem:[#allocation2 + $0x440] sm:$0xff] }
 0x28e   :  { %1257 = vmatprep.subr.mxu1 %v1411_v0 }
 0x28f   :  { %1258 = vmatpush3.msra.mxu1 %v515_v42  ;;  %v803_v42 = vld [vmem:[#allocation2 + $0x438] sm:$0xff] }
 0x290   :  { %1259 = vmatprep.subr.mxu1 %v1411_v0 }
 0x291   :  { %1260 = vmatpush3.msra.mxu1 %v514_v43  ;;  %v802_v43 = vld [vmem:[#allocation2 + $0x430] sm:$0xff] }
 0x292   :  { %1261 = vmatprep.subr.mxu1 %v1411_v0 }
 0x293   :  { %1262 = vmatpush3.msra.mxu1 %v513_v44  ;;  %v801_v44 = vld [vmem:[#allocation2 + $0x428] sm:$0xff] }
 0x294   :  { %1263 = vmatprep.subr.mxu1 %v1411_v0 }
 0x295   :  { %1264 = vmatpush3.msra.mxu1 %v512_v45  ;;  %v800_v45 = vld [vmem:[#allocation2 + $0x420] sm:$0xff] }
 0x296   :  { %1265 = vmatprep.subr.mxu1 %v1411_v0 }
 0x297   :  { %1266 = vmatpush3.msra.mxu1 %v511_v46  ;;  %v799_v46 = vld [vmem:[#allocation2 + $0x418] sm:$0xff] }
 0x298   :  { %1267 = vmatprep.subr.mxu1 %v1411_v0 }
 0x299   :  { %1268 = vmatpush3.msra.mxu1 %v510_v52  ;;  %v798_v52 = vld [vmem:[#allocation2 + $0x410] sm:$0xff] }
 0x29a   :  { %1269 = vmatprep.subr.mxu1 %v1411_v0 }
 0x29b   :  { %1270 = vmatpush3.msra.mxu1 %v509_v53  ;;  %v797_v53 = vld [vmem:[#allocation2 + $0x408] sm:$0xff] }
 0x29c   :  { %1271 = vmatprep.subr.mxu1 %v1411_v0 }
 0x29d   :  { %1272 = vmatpush3.msra.mxu1 %v508_v54  ;;  %v796_v54 = vld [vmem:[#allocation2 + $0x400] sm:$0xff] }
 0x29e   :  { %1311 = vmatprep.subr.mxu1 %v1411_v0 }
 0x33e   :  { %v406_v48 = vpop.f32.mrf.mxu1 }
 0x33f   :  { %v407_v49 = vadd.f32 %v902_v47, %v406_v48  ;;  %v908_v47 = vld [vmem:[%s1633_s2 + $0x6] ss:$0 sm:$0xff] }
 0x340   :  { %v1205_v50 = vpop.f32.mrf.mxu1 }
 0x341   :  { %v410_v51 = vmax.f32 %v407_v49, 0.0 }
 0x343   :  { %1239 = vmatmul.mubr.f32.vlgmr.msra.gmra.mxu0 %v410_v51 }
 0x344   :  { %1308 = vmatprep.mubr.msk.f32.mxu0 %vm1412_vm0, %v1411_v0  ;;  %1277 = vmatpush3.msra.mxu0 %v619_v55  ;;  %v910_v55 = vld [vmem:[%s1633_s2 + $0x7] ss:$0 sm:$0xff] }
 0x345   :  { %1278 = vmatprep.subr.mxu0 %v1411_v0 }
 0x346   :  { %1279 = vmatpush3.msra.mxu0 %v618_v56 }
 0x347   :  { %1280 = vmatprep.subr.mxu0 %v1411_v0 }
 0x348   :  { %1281 = vmatpush3.msra.mxu0 %v617_v57 }
 0x349   :  { %1282 = vmatprep.subr.mxu0 %v1411_v0 }
 0x34a   :  { %1283 = vmatpush3.msra.mxu0 %v616_v58 }
 0x34b   :  { %1284 = vmatprep.subr.mxu0 %v1411_v0 }
 0x34c   :  { %1285 = vmatpush3.msra.mxu0 %v615_v59 }
 0x34d   :  { %1286 = vmatprep.subr.mxu0 %v1411_v0 }
 0x34e   :  { %1287 = vmatpush3.msra.mxu0 %v614_v60  ;;  %v912_v60 = vld [vmem:[%s1633_s2 + $0x8] ss:$0 sm:$0xff] }
 0x34f   :  { %1288 = vmatprep.subr.mxu0 %v1411_v0 }
 0x350   :  { %1289 = vmatpush3.msra.mxu0 %v613_v61 }
 0x351   :  { %1290 = vmatprep.subr.mxu0 %v1411_v0 }
 0x352   :  { %1291 = vmatpush3.msra.mxu0 %v612_v62 }
 0x353   :  { %1292 = vmatprep.subr.mxu0 %v1411_v0 }
 0x354   :  { %1293 = vmatpush3.msra.mxu0 %v611_v63 }
 0x355   :  { %1294 = vmatprep.subr.mxu0 %v1411_v0 }
 0x356   :  { %1295 = vmatpush3.msra.mxu0 %v610_v1 }
 0x357   :  { %1296 = vmatprep.subr.mxu0 %v1411_v0 }
 0x358   :  { %1297 = vmatpush3.msra.mxu0 %v609_v2 }
 0x359   :  { %1298 = vmatprep.subr.mxu0 %v1411_v0 }
 0x35a   :  { %1299 = vmatpush3.msra.mxu0 %v608_v3 }
 0x35b   :  { %1300 = vmatprep.subr.mxu0 %v1411_v0 }
 0x35c   :  { %1301 = vmatpush3.msra.mxu0 %v607_v4 }
 0x35d   :  { %1302 = vmatprep.subr.mxu0 %v1411_v0 }
 0x35e   :  { %1303 = vmatpush3.msra.mxu0 %v606_v10 }
 0x35f   :  { %1304 = vmatprep.subr.mxu0 %v1411_v0 }
 0x360   :  { %1305 = vmatpush3.msra.mxu0 %v605_v11 }
 0x361   :  { %1306 = vmatprep.subr.mxu0 %v1411_v0 }
 0x362   :  { %1307 = vmatpush3.msra.mxu0 %v604_v12 }
 0x363   :  { %1346 = vmatprep.subr.mxu0 %v1411_v0 }
 0x403   :  { %v502_v6 = vpop.f32.mrf.mxu0 }
 0x404   :  { %v503_v7 = vadd.f32 %v904_v5, %v502_v6 }
 0x405   :  { %v1240_v8 = vpop.f32.mrf.mxu0 }
 0x406   :  { %v506_v9 = vmax.f32 %v503_v7, 0.0 }
 0x408   :  { %1274 = vmatmul.mubr.f32.vlgmr.msra.gmra.mxu1 %v506_v9 }
 0x409   :  { %1343 = vmatprep.mubr.msk.f32.mxu1 %vm1412_vm0, %v1411_v0  ;;  %1312 = vmatpush3.msra.mxu1 %v715_v13 }
 0x40a   :  { %1313 = vmatprep.subr.mxu1 %v1411_v0 }
 0x40b   :  { %1314 = vmatpush3.msra.mxu1 %v714_v14 }
 0x40c   :  { %1315 = vmatprep.subr.mxu1 %v1411_v0 }
 0x40d   :  { %1316 = vmatpush3.msra.mxu1 %v713_v15 }
 0x40e   :  { %1317 = vmatprep.subr.mxu1 %v1411_v0 }
 0x40f   :  { %1318 = vmatpush3.msra.mxu1 %v712_v16 }
 0x410   :  { %1319 = vmatprep.subr.mxu1 %v1411_v0 }
 0x411   :  { %1320 = vmatpush3.msra.mxu1 %v711_v17 }
 0x412   :  { %1321 = vmatprep.subr.mxu1 %v1411_v0 }
 0x413   :  { %1322 = vmatpush3.msra.mxu1 %v710_v18 }
 0x414   :  { %1323 = vmatprep.subr.mxu1 %v1411_v0 }
 0x415   :  { %1324 = vmatpush3.msra.mxu1 %v709_v19 }
 0x416   :  { %1325 = vmatprep.subr.mxu1 %v1411_v0 }
 0x417   :  { %1326 = vmatpush3.msra.mxu1 %v708_v20 }
 0x418   :  { %1327 = vmatprep.subr.mxu1 %v1411_v0 }
 0x419   :  { %1328 = vmatpush3.msra.mxu1 %v707_v21 }
 0x41a   :  { %1329 = vmatprep.subr.mxu1 %v1411_v0 }
 0x41b   :  { %1330 = vmatpush3.msra.mxu1 %v706_v22 }
 0x41c   :  { %1331 = vmatprep.subr.mxu1 %v1411_v0 }
 0x41d   :  { %1332 = vmatpush3.msra.mxu1 %v705_v23 }
 0x41e   :  { %1333 = vmatprep.subr.mxu1 %v1411_v0 }
 0x41f   :  { %1334 = vmatpush3.msra.mxu1 %v704_v24 }
 0x420   :  { %1335 = vmatprep.subr.mxu1 %v1411_v0 }
 0x421   :  { %1336 = vmatpush3.msra.mxu1 %v703_v25 }
 0x422   :  { %1337 = vmatprep.subr.mxu1 %v1411_v0 }
 0x423   :  { %1338 = vmatpush3.msra.mxu1 %v702_v31 }
 0x424   :  { %1339 = vmatprep.subr.mxu1 %v1411_v0 }
 0x425   :  { %1340 = vmatpush3.msra.mxu1 %v701_v32 }
 0x426   :  { %1341 = vmatprep.subr.mxu1 %v1411_v0 }
 0x427   :  { %1342 = vmatpush3.msra.mxu1 %v700_v33 }
 0x4c8   :  { %v598_v27 = vpop.f32.mrf.mxu1 }
 0x4c9   :  { %v599_v28 = vadd.f32 %v906_v26, %v598_v27 }
 0x4ca   :  { %v1275_v29 = vpop.f32.mrf.mxu1 }
 0x4cb   :  { %v602_v30 = vmax.f32 %v599_v28, 0.0 }
 0x4cd   :  { %1309 = vmatmul.mubr.f32.vlgmr.msra.gmra.mxu0 %v602_v30 }
 0x4ce   :  { %1378 = vmatprep.mubr.msk.f32.mxu0 %vm1412_vm0, %v1411_v0  ;;  %1347 = vmatpush3.msra.mxu0 %v811_v34 }
 0x4cf   :  { %1348 = vmatprep.subr.mxu0 %v1411_v0 }
 0x4d0   :  { %1349 = vmatpush3.msra.mxu0 %v810_v35 }
 0x4d1   :  { %1350 = vmatprep.subr.mxu0 %v1411_v0 }
 0x4d2   :  { %1351 = vmatpush3.msra.mxu0 %v809_v36 }
 0x4d3   :  { %1352 = vmatprep.subr.mxu0 %v1411_v0 }
 0x4d4   :  { %1353 = vmatpush3.msra.mxu0 %v808_v37 }
 0x4d5   :  { %1354 = vmatprep.subr.mxu0 %v1411_v0 }
 0x4d6   :  { %1355 = vmatpush3.msra.mxu0 %v807_v38 }
 0x4d7   :  { %1356 = vmatprep.subr.mxu0 %v1411_v0 }
 0x4d8   :  { %1357 = vmatpush3.msra.mxu0 %v806_v39 }
 0x4d9   :  { %1358 = vmatprep.subr.mxu0 %v1411_v0 }
 0x4da   :  { %1359 = vmatpush3.msra.mxu0 %v805_v40 }
 0x4db   :  { %1360 = vmatprep.subr.mxu0 %v1411_v0 }
 0x4dc   :  { %1361 = vmatpush3.msra.mxu0 %v804_v41 }
 0x4dd   :  { %1362 = vmatprep.subr.mxu0 %v1411_v0 }
 0x4de   :  { %1363 = vmatpush3.msra.mxu0 %v803_v42 }
 0x4df   :  { %1364 = vmatprep.subr.mxu0 %v1411_v0 }
 0x4e0   :  { %1365 = vmatpush3.msra.mxu0 %v802_v43 }
 0x4e1   :  { %1366 = vmatprep.subr.mxu0 %v1411_v0 }
 0x4e2   :  { %1367 = vmatpush3.msra.mxu0 %v801_v44 }
 0x4e3   :  { %1368 = vmatprep.subr.mxu0 %v1411_v0 }
 0x4e4   :  { %1369 = vmatpush3.msra.mxu0 %v800_v45 }
 0x4e5   :  { %1370 = vmatprep.subr.mxu0 %v1411_v0 }
 0x4e6   :  { %1371 = vmatpush3.msra.mxu0 %v799_v46 }
 0x4e7   :  { %1372 = vmatprep.subr.mxu0 %v1411_v0 }
 0x4e8   :  { %1373 = vmatpush3.msra.mxu0 %v798_v52 }
 0x4e9   :  { %1374 = vmatprep.subr.mxu0 %v1411_v0 }
 0x4ea   :  { %1375 = vmatpush3.msra.mxu0 %v797_v53 }
 0x4eb   :  { %1376 = vmatprep.subr.mxu0 %v1411_v0 }
 0x4ec   :  { %1377 = vmatpush3.msra.mxu0 %v796_v54 }
 0x58d   :  { %v694_v48 = vpop.f32.mrf.mxu0 }
 0x58e   :  { %v695_v49 = vadd.f32 %v908_v47, %v694_v48 }
 0x58f   :  { %v1310_v50 = vpop.f32.mrf.mxu0 }
 0x590   :  { %v698_v51 = vmax.f32 %v695_v49, 0.0 }
 0x592   :  { %1344 = vmatmul.mubr.f32.vlgmr.msra.gmra.mxu1 %v698_v51 }
 0x652   :  { %v790_v56 = vpop.f32.mrf.mxu1 }
 0x653   :  { %v791_v57 = vadd.f32 %v910_v55, %v790_v56 }
 0x654   :  { %v1345_v58 = vpop.f32.mrf.mxu1 }
 0x655   :  { %v794_v59 = vmax.f32 %v791_v57, 0.0 }
 0x657   :  { %1379 = vmatmul.mubr.f32.vlgmr.msra.gmra.mxu0 %v794_v59 }
 0x717   :  { %v886_v61 = vpop.f32.mrf.mxu0 }
 0x718   :  { %v887_v62 = vadd.f32 %v912_v60, %v886_v61 }
 0x719   :  { %v1380_v63 = vpop.f32.mrf.mxu0 }
 0x71a   :  { %890 = vst [vmem:[%s1634_s3] sm:$0xff] %v887_v62 }
 0x71b   :  { %895 = vsyncpa [#allocation3], 1 }

</bundles_post_ra>
